<compile_context>
chip_gen: v7x
topology: tpu7x:2x2x1
jax: 0.10.0
libtpu: 0.0.40
codegen_flags: <defaults>
</compile_context>

<pallas_src>
import functools
import math

import jax
import jax.numpy as jnp
from jax.experimental import pallas as pl
from jax.experimental.pallas import tpu as pltpu


def _layernorm(x, gamma, beta, eps=1e-5):
    # PyTorch nn.LayerNorm: biased variance, eps inside sqrt.
    mean = jnp.mean(x, axis=-1, keepdims=True)
    var = jnp.mean((x - mean) ** 2, axis=-1, keepdims=True)
    return (x - mean) * jax.lax.rsqrt(var + eps) * gamma + beta


def _gelu_exact(x):
    # nn.GELU default: exact erf formulation (kept exact for parity).
    return 0.5 * x * (1.0 + jax.lax.erf(x * (1.0 / math.sqrt(2.0))))


def block_kernel(x_ref,
                 n1g_ref, n1b_ref,
                 wqkv_ref, wproj_ref, bproj_ref,
                 n2g_ref, n2b_ref,
                 w1_ref, b1_ref,
                 w2_ref, b2_ref,
                 o_ref,
                 *, num_heads):
    f32 = jnp.float32
    bf16 = jnp.bfloat16
    x = x_ref[0].astype(f32)                               # (N, C)
    N, C = x.shape
    H = num_heads
    hd = C // H

    # ---------------- attention branch: x + attn(norm1(x)) ----------------
    xn = _layernorm(x, n1g_ref[...], n1b_ref[...])
    # Single lane-dense QKV projection: contraction depth C, output 3C lanes.
    # qkv_bias=False (module default) -> no bias.  Softmax scale is already
    # baked into the Wq columns (done once in prepare_params).
    qkv = jnp.dot(xn.astype(bf16), wqkv_ref[...],
                  preferred_element_type=f32)              # (N, 3C) f32

    # Head split: static lane slices + stack along a new leading (major) axis.
    # No matmuls in this Python loop -- pure layout plumbing.
    q = jnp.stack([qkv[:, 0 * C + h * hd: 0 * C + (h + 1) * hd]
                   for h in range(H)], axis=0)             # (H, N, hd)
    k = jnp.stack([qkv[:, 1 * C + h * hd: 1 * C + (h + 1) * hd]
                   for h in range(H)], axis=0)
    v = jnp.stack([qkv[:, 2 * C + h * hd: 2 * C + (h + 1) * hd]
                   for h in range(H)], axis=0)

    # Per-head attention as batched einsums (heads = leading batch dim).
    s = jnp.einsum('hnd,hmd->hnm', q.astype(bf16), k.astype(bf16),
                   preferred_element_type=f32)             # (H, N, N) f32
    s = s - jnp.max(s, axis=-1, keepdims=True)
    p = jnp.exp(s)
    l = jnp.sum(p, axis=-1, keepdims=True)                 # (H, N, 1)

    o = jnp.einsum('hnm,hmd->hnd', p.astype(bf16), v.astype(bf16),
                   preferred_element_type=f32)             # (H, N, hd)
    o = o * pl.reciprocal(l, approx=False)                 # exact; small volume

    # Concat heads -> (N, C), then ONE output projection of depth C (this is
    # exactly concat(heads) @ Wproj, i.e. the head sum happens inside the MXU
    # accumulator -- no (H, N, C) f32 intermediate, no VALU head adds).
    oc = jnp.concatenate([o[h] for h in range(H)], axis=1).astype(bf16)
    attn_out = jnp.dot(oc, wproj_ref[...],
                       preferred_element_type=f32) + bproj_ref[...]
    x1 = x + attn_out          # attn_drop / proj_drop / drop_path are p=0

    # ---------------- MLP branch: x1 + mlp(norm2(x1)) ----------------
    # TODO(synk): Mlp_norm definition not provided; implemented as the standard
    # timm Mlp (fc1 -> GELU -> fc2) with drop=0.
    xn2 = _layernorm(x1, n2g_ref[...], n2b_ref[...])
    h1 = jnp.dot(xn2.astype(bf16), w1_ref[...],
                 preferred_element_type=f32) + b1_ref[...]
    h1 = _gelu_exact(h1)
    y = jnp.dot(h1.astype(bf16), w2_ref[...],
                preferred_element_type=f32) + b2_ref[...]
    o_ref[0] = (x1 + y).astype(o_ref.dtype)


def prepare_params(params, num_heads):
    """One-time, out-of-the-forward-path weight layout prep for the kernel:
    bake the softmax scale into the Wq columns and cast matmul weights to bf16.
    """
    C = params["wproj"].shape[0]
    hd = C // num_heads
    scale = hd ** (-0.5)
    bf16 = jnp.bfloat16
    wqkv = params["wqkv"].at[:, :C].multiply(scale)        # scale folded into Wq
    kp = dict(params)
    kp["wqkv"] = wqkv.astype(bf16)                          # (C, 3C)
    kp["wproj"] = params["wproj"].astype(bf16)              # (C, C)
    kp["w1"] = params["w1"].astype(bf16)                    # (C, Hm)
    kp["w2"] = params["w2"].astype(bf16)                    # (Hm, C)
    return kp


def vit_block(x, kp, num_heads):
    B, N, C = x.shape
    Hm = kp["w1"].shape[1]
    kernel = functools.partial(block_kernel, num_heads=num_heads)

    rep2 = lambda b: (0, 0)
    in_specs = [
        pl.BlockSpec((1, N, C), lambda b: (b, 0, 0)),       # x
        pl.BlockSpec((1, C), rep2),                         # norm1 gamma
        pl.BlockSpec((1, C), rep2),                         # norm1 beta
        pl.BlockSpec((C, 3 * C), rep2),                     # Wqkv (scale baked)
        pl.BlockSpec((C, C), rep2),                         # Wproj
        pl.BlockSpec((1, C), rep2),                         # bproj
        pl.BlockSpec((1, C), rep2),                         # norm2 gamma
        pl.BlockSpec((1, C), rep2),                         # norm2 beta
        pl.BlockSpec((C, Hm), rep2),                        # W1
        pl.BlockSpec((1, Hm), rep2),                        # b1
        pl.BlockSpec((Hm, C), rep2),                        # W2
        pl.BlockSpec((1, C), rep2),                         # b2
    ]
    out_spec = pl.BlockSpec((1, N, C), lambda b: (b, 0, 0))

    return pl.pallas_call(
        kernel,
        out_shape=jax.ShapeDtypeStruct((B, N, C), x.dtype),
        grid=(B,),
        in_specs=in_specs,
        out_specs=out_spec,
        compiler_params=pltpu.CompilerParams(
            dimension_semantics=("parallel",),      # batch items independent
            vmem_limit_bytes=48 * 1024 * 1024),     # headroom on v7x (64 MiB)
    )(x,
      kp["n1g"], kp["n1b"],
      kp["wqkv"], kp["wproj"], kp["bproj"],
      kp["n2g"], kp["n2b"],
      kp["w1"], kp["b1"],
      kp["w2"], kp["b2"])


def vit_block_ref(x, p, num_heads):
    """Pure-JAX f32 reference mirroring the PyTorch Block.forward."""
    B, N, C = x.shape
    hd = C // num_heads
    scale = hd ** (-0.5)

    def ln(z, g, b):
        m = jnp.mean(z, -1, keepdims=True)
        v = jnp.mean((z - m) ** 2, -1, keepdims=True)
        return (z - m) / jnp.sqrt(v + 1e-5) * g + b

    xn = ln(x, p["n1g"], p["n1b"])
    qkv = xn @ p["wqkv"]                                   # (B, N, 3C)
    qkv = qkv.reshape(B, N, 3, num_heads, hd).transpose(2, 0, 3, 1, 4)
    q, k, v = qkv[0], qkv[1], qkv[2]                       # (B, H, N, hd)
    attn = jnp.einsum("bhnd,bhmd->bhnm", q, k) * scale
    attn = jax.nn.softmax(attn, axis=-1)
    o = jnp.einsum("bhnm,bhmd->bhnd", attn, v)
    o = o.transpose(0, 2, 1, 3).reshape(B, N, C)
    o = o @ p["wproj"] + p["bproj"]
    x = x + o
    xn2 = ln(x, p["n2g"], p["n2b"])
    h = xn2 @ p["w1"] + p["b1"]
    h = 0.5 * h * (1.0 + jax.lax.erf(h / math.sqrt(2.0)))
    y = h @ p["w2"] + p["b2"]
    return x + y


def init_params(key, dim, mlp_hidden):
    ks = jax.random.split(key, 6)
    s = 0.02
    return {
        "n1g": jnp.ones((1, dim), jnp.float32),
        "n1b": jnp.zeros((1, dim), jnp.float32),
        "wqkv": s * jax.random.normal(ks[0], (dim, 3 * dim), jnp.float32),
        "wproj": s * jax.random.normal(ks[1], (dim, dim), jnp.float32),
        "bproj": s * jax.random.normal(ks[2], (1, dim), jnp.float32),
        "n2g": jnp.ones((1, dim), jnp.float32),
        "n2b": jnp.zeros((1, dim), jnp.float32),
        "w1": s * jax.random.normal(ks[3], (dim, mlp_hidden), jnp.float32),
        "b1": s * jax.random.normal(ks[4], (1, mlp_hidden), jnp.float32),
        "w2": s * jax.random.normal(ks[5], (mlp_hidden, dim), jnp.float32),
        "b2": jnp.zeros((1, dim), jnp.float32),
    }


if __name__ == "__main__":
    B, N, C = 2, 8, 32
    num_heads = 4
    mlp_ratio = 4.0
    mlp_hidden = int(C * mlp_ratio)

    key = jax.random.PRNGKey(0)
    kx, kp_key = jax.random.split(key)
    x = jax.random.normal(kx, (B, N, C), jnp.float32)
    params = init_params(kp_key, C, mlp_hidden)

    # One-time kernel-layout weight prep (bf16 cast + scale bake), outside the
    # per-call path.
    kparams = prepare_params(params, num_heads)

    out = jax.block_until_ready(vit_block(x, kparams, num_heads))
    ref = vit_block_ref(x, params, num_heads)

    assert out.shape == (B, N, C)
    max_err = float(jnp.max(jnp.abs(out - ref)))
    # bf16 MXU operands with f32 accumulation -> bf16-level tolerance.
    assert jnp.allclose(out, ref, rtol=2e-2, atol=2e-2), max_err

    print("KERNEL_OK")
</pallas_src>

<mosaic_0001>
module attributes {stable_mosaic.version = 11 : i64} {
  func.func @block_kernel(%arg0: i32, %arg1: memref<1x8x32xf32, #tpu.memory_space<vmem>>, %arg2: memref<1x32xf32, #tpu.memory_space<vmem>>, %arg3: memref<1x32xf32, #tpu.memory_space<vmem>>, %arg4: memref<32x96xbf16, #tpu.memory_space<vmem>>, %arg5: memref<32x32xbf16, #tpu.memory_space<vmem>>, %arg6: memref<1x32xf32, #tpu.memory_space<vmem>>, %arg7: memref<1x32xf32, #tpu.memory_space<vmem>>, %arg8: memref<1x32xf32, #tpu.memory_space<vmem>>, %arg9: memref<32x128xbf16, #tpu.memory_space<vmem>>, %arg10: memref<1x128xf32, #tpu.memory_space<vmem>>, %arg11: memref<128x32xbf16, #tpu.memory_space<vmem>>, %arg12: memref<1x32xf32, #tpu.memory_space<vmem>>, %arg13: memref<1x8x32xf32, #tpu.memory_space<vmem>>) attributes {dimension_semantics = [#tpu.dimension_semantics<parallel>], iteration_bounds = array<i64: 2>, scalar_prefetch = 0 : i64, scratch_operands = 0 : i64, tpu.core_type = #tpu.core_type<tc>, window_params = [{transform_indices = @transform_0, window_bounds = array<i64: 1, 8, 32>}, {pipeline_mode = #tpu.pipeline_mode<synchronous>, transform_indices = @transform_1, window_bounds = array<i64: 1, 32>}, {pipeline_mode = #tpu.pipeline_mode<synchronous>, transform_indices = @transform_2, window_bounds = array<i64: 1, 32>}, {pipeline_mode = #tpu.pipeline_mode<synchronous>, transform_indices = @transform_3, window_bounds = array<i64: 32, 96>}, {pipeline_mode = #tpu.pipeline_mode<synchronous>, transform_indices = @transform_4, window_bounds = array<i64: 32, 32>}, {pipeline_mode = #tpu.pipeline_mode<synchronous>, transform_indices = @transform_5, window_bounds = array<i64: 1, 32>}, {pipeline_mode = #tpu.pipeline_mode<synchronous>, transform_indices = @transform_6, window_bounds = array<i64: 1, 32>}, {pipeline_mode = #tpu.pipeline_mode<synchronous>, transform_indices = @transform_7, window_bounds = array<i64: 1, 32>}, {pipeline_mode = #tpu.pipeline_mode<synchronous>, transform_indices = @transform_8, window_bounds = array<i64: 32, 128>}, {pipeline_mode = #tpu.pipeline_mode<synchronous>, transform_indices = @transform_9, window_bounds = array<i64: 1, 128>}, {pipeline_mode = #tpu.pipeline_mode<synchronous>, transform_indices = @transform_10, window_bounds = array<i64: 128, 32>}, {pipeline_mode = #tpu.pipeline_mode<synchronous>, transform_indices = @transform_11, window_bounds = array<i64: 1, 32>}, {transform_indices = @transform_12, window_bounds = array<i64: 1, 8, 32>}]} {
    %c0 = arith.constant 0 : index
    %c0_0 = arith.constant 0 : index
    %c0_1 = arith.constant 0 : index
    %0 = vector.load %arg1[%c0, %c0_0, %c0_1] : memref<1x8x32xf32, #tpu.memory_space<vmem>>, vector<1x8x32xf32>
    %1 = vector.shape_cast %0 : vector<1x8x32xf32> to vector<8x32xf32>
    %c0_2 = arith.constant 0 : index
    %c0_3 = arith.constant 0 : index
    %2 = vector.load %arg2[%c0_2, %c0_3] : memref<1x32xf32, #tpu.memory_space<vmem>>, vector<1x32xf32>
    %c0_4 = arith.constant 0 : index
    %c0_5 = arith.constant 0 : index
    %3 = vector.load %arg3[%c0_4, %c0_5] : memref<1x32xf32, #tpu.memory_space<vmem>>, vector<1x32xf32>
    %cst = arith.constant dense<0.000000e+00> : vector<8xf32>
    %4 = vector.multi_reduction <add>, %1, %cst [1] : vector<8x32xf32> to vector<8xf32>
    %5 = vector.shape_cast %4 : vector<8xf32> to vector<8x1xf32>
    %cst_6 = arith.constant 3.200000e+01 : f32
    %6 = vector.broadcast %cst_6 : f32 to vector<8x1xf32>
    %7 = arith.divf %5, %6 : vector<8x1xf32>
    %8 = vector.broadcast %7 : vector<8x1xf32> to vector<8x32xf32>
    %9 = arith.subf %1, %8 : vector<8x32xf32>
    %10 = arith.mulf %9, %9 : vector<8x32xf32>
    %cst_7 = arith.constant dense<0.000000e+00> : vector<8xf32>
    %11 = vector.multi_reduction <add>, %10, %cst_7 [1] : vector<8x32xf32> to vector<8xf32>
    %12 = vector.shape_cast %11 : vector<8xf32> to vector<8x1xf32>
    %cst_8 = arith.constant 3.200000e+01 : f32
    %13 = vector.broadcast %cst_8 : f32 to vector<8x1xf32>
    %14 = arith.divf %12, %13 : vector<8x1xf32>
    %15 = vector.broadcast %7 : vector<8x1xf32> to vector<8x32xf32>
    %16 = arith.subf %1, %15 : vector<8x32xf32>
    %cst_9 = arith.constant 9.99999974E-6 : f32
    %17 = vector.broadcast %cst_9 : f32 to vector<8x1xf32>
    %18 = arith.addf %14, %17 : vector<8x1xf32>
    %19 = math.rsqrt %18 : vector<8x1xf32>
    %20 = vector.broadcast %19 : vector<8x1xf32> to vector<8x32xf32>
    %21 = arith.mulf %16, %20 : vector<8x32xf32>
    %22 = vector.broadcast %2 : vector<1x32xf32> to vector<8x32xf32>
    %23 = arith.mulf %21, %22 : vector<8x32xf32>
    %24 = vector.broadcast %3 : vector<1x32xf32> to vector<8x32xf32>
    %25 = arith.addf %23, %24 : vector<8x32xf32>
    %26 = arith.truncf %25 : vector<8x32xf32> to vector<8x32xbf16>
    %c0_10 = arith.constant 0 : index
    %c0_11 = arith.constant 0 : index
    %27 = vector.load %arg4[%c0_10, %c0_11] : memref<32x96xbf16, #tpu.memory_space<vmem>>, vector<32x96xbf16>
    %cst_12 = arith.constant dense<0.000000e+00> : vector<8x96xf32>
    %28 = tpu.matmul %26, %27, %cst_12 {dimension_numbers = #tpu.dot_dimension_numbers<[1], [0], [0], [1], [0, 0, 1, 1], [], []>} : vector<8x32xbf16>, vector<32x96xbf16>, vector<8x96xf32> -> vector<8x96xf32>
    %29 = vector.extract_strided_slice %28 {offsets = [0, 0], sizes = [8, 8], strides = [1, 1]} : vector<8x96xf32> to vector<8x8xf32>
    %30 = vector.extract_strided_slice %28 {offsets = [0, 8], sizes = [8, 8], strides = [1, 1]} : vector<8x96xf32> to vector<8x8xf32>
    %31 = vector.extract_strided_slice %28 {offsets = [0, 16], sizes = [8, 8], strides = [1, 1]} : vector<8x96xf32> to vector<8x8xf32>
    %32 = vector.extract_strided_slice %28 {offsets = [0, 24], sizes = [8, 8], strides = [1, 1]} : vector<8x96xf32> to vector<8x8xf32>
    %33 = vector.shape_cast %29 : vector<8x8xf32> to vector<1x8x8xf32>
    %34 = vector.shape_cast %30 : vector<8x8xf32> to vector<1x8x8xf32>
    %35 = vector.shape_cast %31 : vector<8x8xf32> to vector<1x8x8xf32>
    %36 = vector.shape_cast %32 : vector<8x8xf32> to vector<1x8x8xf32>
    %37 = tpu.concatenate %33, %34, %35, %36 in 0 : vector<1x8x8xf32>, vector<1x8x8xf32>, vector<1x8x8xf32>, vector<1x8x8xf32> -> vector<4x8x8xf32>
    %38 = vector.extract_strided_slice %28 {offsets = [0, 32], sizes = [8, 8], strides = [1, 1]} : vector<8x96xf32> to vector<8x8xf32>
    %39 = vector.extract_strided_slice %28 {offsets = [0, 40], sizes = [8, 8], strides = [1, 1]} : vector<8x96xf32> to vector<8x8xf32>
    %40 = vector.extract_strided_slice %28 {offsets = [0, 48], sizes = [8, 8], strides = [1, 1]} : vector<8x96xf32> to vector<8x8xf32>
    %41 = vector.extract_strided_slice %28 {offsets = [0, 56], sizes = [8, 8], strides = [1, 1]} : vector<8x96xf32> to vector<8x8xf32>
    %42 = vector.shape_cast %38 : vector<8x8xf32> to vector<1x8x8xf32>
    %43 = vector.shape_cast %39 : vector<8x8xf32> to vector<1x8x8xf32>
    %44 = vector.shape_cast %40 : vector<8x8xf32> to vector<1x8x8xf32>
    %45 = vector.shape_cast %41 : vector<8x8xf32> to vector<1x8x8xf32>
    %46 = tpu.concatenate %42, %43, %44, %45 in 0 : vector<1x8x8xf32>, vector<1x8x8xf32>, vector<1x8x8xf32>, vector<1x8x8xf32> -> vector<4x8x8xf32>
    %47 = vector.extract_strided_slice %28 {offsets = [0, 64], sizes = [8, 8], strides = [1, 1]} : vector<8x96xf32> to vector<8x8xf32>
    %48 = vector.extract_strided_slice %28 {offsets = [0, 72], sizes = [8, 8], strides = [1, 1]} : vector<8x96xf32> to vector<8x8xf32>
    %49 = vector.extract_strided_slice %28 {offsets = [0, 80], sizes = [8, 8], strides = [1, 1]} : vector<8x96xf32> to vector<8x8xf32>
    %50 = vector.extract_strided_slice %28 {offsets = [0, 88], sizes = [8, 8], strides = [1, 1]} : vector<8x96xf32> to vector<8x8xf32>
    %51 = vector.shape_cast %47 : vector<8x8xf32> to vector<1x8x8xf32>
    %52 = vector.shape_cast %48 : vector<8x8xf32> to vector<1x8x8xf32>
    %53 = vector.shape_cast %49 : vector<8x8xf32> to vector<1x8x8xf32>
    %54 = vector.shape_cast %50 : vector<8x8xf32> to vector<1x8x8xf32>
    %55 = tpu.concatenate %51, %52, %53, %54 in 0 : vector<1x8x8xf32>, vector<1x8x8xf32>, vector<1x8x8xf32>, vector<1x8x8xf32> -> vector<4x8x8xf32>
    %56 = arith.truncf %37 : vector<4x8x8xf32> to vector<4x8x8xbf16>
    %57 = arith.truncf %46 : vector<4x8x8xf32> to vector<4x8x8xbf16>
    "tpu.trace_start"() <{level = 10 : i32, message = "hnd,hmd->hnm"}> : () -> ()
    %cst_13 = arith.constant dense<0.000000e+00> : vector<4x8x8xf32>
    %58 = tpu.matmul %56, %57, %cst_13 {dimension_numbers = #tpu.dot_dimension_numbers<[2], [2], [1], [1], [0, 0, 0, 1, 1, 1], [0], [0]>} : vector<4x8x8xbf16>, vector<4x8x8xbf16>, vector<4x8x8xf32> -> vector<4x8x8xf32>
    "tpu.trace_stop"() : () -> ()
    %cst_14 = arith.constant dense<0xFF800000> : vector<4x8xf32>
    %59 = vector.multi_reduction <maximumf>, %58, %cst_14 [2] : vector<4x8x8xf32> to vector<4x8xf32>
    %60 = vector.shape_cast %59 : vector<4x8xf32> to vector<4x8x1xf32>
    %61 = vector.broadcast %60 : vector<4x8x1xf32> to vector<4x8x8xf32>
    %62 = arith.subf %58, %61 : vector<4x8x8xf32>
    %63 = math.exp %62 : vector<4x8x8xf32>
    %cst_15 = arith.constant dense<0.000000e+00> : vector<4x8xf32>
    %64 = vector.multi_reduction <add>, %63, %cst_15 [2] : vector<4x8x8xf32> to vector<4x8xf32>
    %65 = vector.shape_cast %64 : vector<4x8xf32> to vector<4x8x1xf32>
    %66 = arith.truncf %63 : vector<4x8x8xf32> to vector<4x8x8xbf16>
    %67 = arith.truncf %55 : vector<4x8x8xf32> to vector<4x8x8xbf16>
    "tpu.trace_start"() <{level = 10 : i32, message = "hnm,hmd->hnd"}> : () -> ()
    %cst_16 = arith.constant dense<0.000000e+00> : vector<4x8x8xf32>
    %68 = tpu.matmul %66, %67, %cst_16 {dimension_numbers = #tpu.dot_dimension_numbers<[2], [1], [1], [2], [0, 0, 0, 1, 1, 2], [0], [0]>} : vector<4x8x8xbf16>, vector<4x8x8xbf16>, vector<4x8x8xf32> -> vector<4x8x8xf32>
    "tpu.trace_stop"() : () -> ()
    %69 = tpu.reciprocal %65 : vector<4x8x1xf32> -> vector<4x8x1xf32>
    %70 = vector.broadcast %69 : vector<4x8x1xf32> to vector<4x8x8xf32>
    %71 = arith.mulf %68, %70 : vector<4x8x8xf32>
    %72 = vector.extract_strided_slice %71 {offsets = [0, 0, 0], sizes = [1, 8, 8], strides = [1, 1, 1]} : vector<4x8x8xf32> to vector<1x8x8xf32>
    %73 = vector.shape_cast %72 : vector<1x8x8xf32> to vector<8x8xf32>
    %74 = vector.extract_strided_slice %71 {offsets = [1, 0, 0], sizes = [1, 8, 8], strides = [1, 1, 1]} : vector<4x8x8xf32> to vector<1x8x8xf32>
    %75 = vector.shape_cast %74 : vector<1x8x8xf32> to vector<8x8xf32>
    %76 = vector.extract_strided_slice %71 {offsets = [2, 0, 0], sizes = [1, 8, 8], strides = [1, 1, 1]} : vector<4x8x8xf32> to vector<1x8x8xf32>
    %77 = vector.shape_cast %76 : vector<1x8x8xf32> to vector<8x8xf32>
    %78 = vector.extract_strided_slice %71 {offsets = [3, 0, 0], sizes = [1, 8, 8], strides = [1, 1, 1]} : vector<4x8x8xf32> to vector<1x8x8xf32>
    %79 = vector.shape_cast %78 : vector<1x8x8xf32> to vector<8x8xf32>
    %80 = tpu.concatenate %73, %75, %77, %79 in 1 : vector<8x8xf32>, vector<8x8xf32>, vector<8x8xf32>, vector<8x8xf32> -> vector<8x32xf32>
    %81 = arith.truncf %80 : vector<8x32xf32> to vector<8x32xbf16>
    %c0_17 = arith.constant 0 : index
    %c0_18 = arith.constant 0 : index
    %82 = vector.load %arg5[%c0_17, %c0_18] : memref<32x32xbf16, #tpu.memory_space<vmem>>, vector<32x32xbf16>
    %cst_19 = arith.constant dense<0.000000e+00> : vector<8x32xf32>
    %83 = tpu.matmul %81, %82, %cst_19 {dimension_numbers = #tpu.dot_dimension_numbers<[1], [0], [0], [1], [0, 0, 1, 1], [], []>} : vector<8x32xbf16>, vector<32x32xbf16>, vector<8x32xf32> -> vector<8x32xf32>
    %c0_20 = arith.constant 0 : index
    %c0_21 = arith.constant 0 : index
    %84 = vector.load %arg6[%c0_20, %c0_21] : memref<1x32xf32, #tpu.memory_space<vmem>>, vector<1x32xf32>
    %85 = vector.broadcast %84 : vector<1x32xf32> to vector<8x32xf32>
    %86 = arith.addf %83, %85 : vector<8x32xf32>
    %87 = arith.addf %1, %86 : vector<8x32xf32>
    %c0_22 = arith.constant 0 : index
    %c0_23 = arith.constant 0 : index
    %88 = vector.load %arg7[%c0_22, %c0_23] : memref<1x32xf32, #tpu.memory_space<vmem>>, vector<1x32xf32>
    %c0_24 = arith.constant 0 : index
    %c0_25 = arith.constant 0 : index
    %89 = vector.load %arg8[%c0_24, %c0_25] : memref<1x32xf32, #tpu.memory_space<vmem>>, vector<1x32xf32>
    %cst_26 = arith.constant dense<0.000000e+00> : vector<8xf32>
    %90 = vector.multi_reduction <add>, %87, %cst_26 [1] : vector<8x32xf32> to vector<8xf32>
    %91 = vector.shape_cast %90 : vector<8xf32> to vector<8x1xf32>
    %cst_27 = arith.constant 3.200000e+01 : f32
    %92 = vector.broadcast %cst_27 : f32 to vector<8x1xf32>
    %93 = arith.divf %91, %92 : vector<8x1xf32>
    %94 = vector.broadcast %93 : vector<8x1xf32> to vector<8x32xf32>
    %95 = arith.subf %87, %94 : vector<8x32xf32>
    %96 = arith.mulf %95, %95 : vector<8x32xf32>
    %cst_28 = arith.constant dense<0.000000e+00> : vector<8xf32>
    %97 = vector.multi_reduction <add>, %96, %cst_28 [1] : vector<8x32xf32> to vector<8xf32>
    %98 = vector.shape_cast %97 : vector<8xf32> to vector<8x1xf32>
    %cst_29 = arith.constant 3.200000e+01 : f32
    %99 = vector.broadcast %cst_29 : f32 to vector<8x1xf32>
    %100 = arith.divf %98, %99 : vector<8x1xf32>
    %101 = vector.broadcast %93 : vector<8x1xf32> to vector<8x32xf32>
    %102 = arith.subf %87, %101 : vector<8x32xf32>
    %cst_30 = arith.constant 9.99999974E-6 : f32
    %103 = vector.broadcast %cst_30 : f32 to vector<8x1xf32>
    %104 = arith.addf %100, %103 : vector<8x1xf32>
    %105 = math.rsqrt %104 : vector<8x1xf32>
    %106 = vector.broadcast %105 : vector<8x1xf32> to vector<8x32xf32>
    %107 = arith.mulf %102, %106 : vector<8x32xf32>
    %108 = vector.broadcast %88 : vector<1x32xf32> to vector<8x32xf32>
    %109 = arith.mulf %107, %108 : vector<8x32xf32>
    %110 = vector.broadcast %89 : vector<1x32xf32> to vector<8x32xf32>
    %111 = arith.addf %109, %110 : vector<8x32xf32>
    %112 = arith.truncf %111 : vector<8x32xf32> to vector<8x32xbf16>
    %c0_31 = arith.constant 0 : index
    %c0_32 = arith.constant 0 : index
    %113 = vector.load %arg9[%c0_31, %c0_32] : memref<32x128xbf16, #tpu.memory_space<vmem>>, vector<32x128xbf16>
    %cst_33 = arith.constant dense<0.000000e+00> : vector<8x128xf32>
    %114 = tpu.matmul %112, %113, %cst_33 {dimension_numbers = #tpu.dot_dimension_numbers<[1], [0], [0], [1], [0, 0, 1, 1], [], []>} : vector<8x32xbf16>, vector<32x128xbf16>, vector<8x128xf32> -> vector<8x128xf32>
    %c0_34 = arith.constant 0 : index
    %c0_35 = arith.constant 0 : index
    %115 = vector.load %arg10[%c0_34, %c0_35] : memref<1x128xf32, #tpu.memory_space<vmem>>, vector<1x128xf32>
    %116 = vector.broadcast %115 : vector<1x128xf32> to vector<8x128xf32>
    %117 = arith.addf %114, %116 : vector<8x128xf32>
    %cst_36 = arith.constant 5.000000e-01 : f32
    %118 = vector.broadcast %cst_36 : f32 to vector<8x128xf32>
    %119 = arith.mulf %118, %117 : vector<8x128xf32>
    %cst_37 = arith.constant 0.707106769 : f32
    %120 = vector.broadcast %cst_37 : f32 to vector<8x128xf32>
    %121 = arith.mulf %117, %120 : vector<8x128xf32>
    %122 = math.erf %121 : vector<8x128xf32>
    %cst_38 = arith.constant 1.000000e+00 : f32
    %123 = vector.broadcast %cst_38 : f32 to vector<8x128xf32>
    %124 = arith.addf %123, %122 : vector<8x128xf32>
    %125 = arith.mulf %119, %124 : vector<8x128xf32>
    %126 = arith.truncf %125 : vector<8x128xf32> to vector<8x128xbf16>
    %c0_39 = arith.constant 0 : index
    %c0_40 = arith.constant 0 : index
    %127 = vector.load %arg11[%c0_39, %c0_40] : memref<128x32xbf16, #tpu.memory_space<vmem>>, vector<128x32xbf16>
    %cst_41 = arith.constant dense<0.000000e+00> : vector<8x32xf32>
    %128 = tpu.matmul %126, %127, %cst_41 {dimension_numbers = #tpu.dot_dimension_numbers<[1], [0], [0], [1], [0, 0, 1, 1], [], []>} : vector<8x128xbf16>, vector<128x32xbf16>, vector<8x32xf32> -> vector<8x32xf32>
    %c0_42 = arith.constant 0 : index
    %c0_43 = arith.constant 0 : index
    %129 = vector.load %arg12[%c0_42, %c0_43] : memref<1x32xf32, #tpu.memory_space<vmem>>, vector<1x32xf32>
    %130 = vector.broadcast %129 : vector<1x32xf32> to vector<8x32xf32>
    %131 = arith.addf %128, %130 : vector<8x32xf32>
    %132 = arith.addf %87, %131 : vector<8x32xf32>
    %c0_44 = arith.constant 0 : index
    %c0_45 = arith.constant 0 : index
    %c0_46 = arith.constant 0 : index
    %133 = vector.load %arg13[%c0_44, %c0_45, %c0_46] : memref<1x8x32xf32, #tpu.memory_space<vmem>>, vector<1x8x32xf32>
    %134 = vector.shape_cast %133 : vector<1x8x32xf32> to vector<8x32xf32>
    %135 = vector.shape_cast %132 : vector<8x32xf32> to vector<1x8x32xf32>
    tpu.vector_store %arg13[%c0_44, %c0_45, %c0_46], %135 {strides = array<i32>} : memref<1x8x32xf32, #tpu.memory_space<vmem>>, vector<1x8x32xf32>,
    return
  }
  func.func @transform_0(%arg0: i32) -> (i32, i32, i32) {
    %c0_i32 = arith.constant 0 : i32
    %c0_i32_0 = arith.constant 0 : i32
    %c0_i32_1 = arith.constant 0 : i32
    return %arg0, %c0_i32, %c0_i32_0 : i32, i32, i32
  }
  func.func @transform_1(%arg0: i32) -> (i32, i32) {
    %c0_i32 = arith.constant 0 : i32
    %c0_i32_0 = arith.constant 0 : i32
    %c0_i32_1 = arith.constant 0 : i32
    return %c0_i32, %c0_i32_0 : i32, i32
  }
  func.func @transform_2(%arg0: i32) -> (i32, i32) {
    %c0_i32 = arith.constant 0 : i32
    %c0_i32_0 = arith.constant 0 : i32
    %c0_i32_1 = arith.constant 0 : i32
    return %c0_i32, %c0_i32_0 : i32, i32
  }
  func.func @transform_3(%arg0: i32) -> (i32, i32) {
    %c0_i32 = arith.constant 0 : i32
    %c0_i32_0 = arith.constant 0 : i32
    %c0_i32_1 = arith.constant 0 : i32
    return %c0_i32, %c0_i32_0 : i32, i32
  }
  func.func @transform_4(%arg0: i32) -> (i32, i32) {
    %c0_i32 = arith.constant 0 : i32
    %c0_i32_0 = arith.constant 0 : i32
    %c0_i32_1 = arith.constant 0 : i32
    return %c0_i32, %c0_i32_0 : i32, i32
  }
  func.func @transform_5(%arg0: i32) -> (i32, i32) {
    %c0_i32 = arith.constant 0 : i32
    %c0_i32_0 = arith.constant 0 : i32
    %c0_i32_1 = arith.constant 0 : i32
    return %c0_i32, %c0_i32_0 : i32, i32
  }
  func.func @transform_6(%arg0: i32) -> (i32, i32) {
    %c0_i32 = arith.constant 0 : i32
    %c0_i32_0 = arith.constant 0 : i32
    %c0_i32_1 = arith.constant 0 : i32
    return %c0_i32, %c0_i32_0 : i32, i32
  }
  func.func @transform_7(%arg0: i32) -> (i32, i32) {
    %c0_i32 = arith.constant 0 : i32
    %c0_i32_0 = arith.constant 0 : i32
    %c0_i32_1 = arith.constant 0 : i32
    return %c0_i32, %c0_i32_0 : i32, i32
  }
  func.func @transform_8(%arg0: i32) -> (i32, i32) {
    %c0_i32 = arith.constant 0 : i32
    %c0_i32_0 = arith.constant 0 : i32
    %c0_i32_1 = arith.constant 0 : i32
    return %c0_i32, %c0_i32_0 : i32, i32
  }
  func.func @transform_9(%arg0: i32) -> (i32, i32) {
    %c0_i32 = arith.constant 0 : i32
    %c0_i32_0 = arith.constant 0 : i32
    %c0_i32_1 = arith.constant 0 : i32
    return %c0_i32, %c0_i32_0 : i32, i32
  }
  func.func @transform_10(%arg0: i32) -> (i32, i32) {
    %c0_i32 = arith.constant 0 : i32
    %c0_i32_0 = arith.constant 0 : i32
    %c0_i32_1 = arith.constant 0 : i32
    return %c0_i32, %c0_i32_0 : i32, i32
  }
  func.func @transform_11(%arg0: i32) -> (i32, i32) {
    %c0_i32 = arith.constant 0 : i32
    %c0_i32_0 = arith.constant 0 : i32
    %c0_i32_1 = arith.constant 0 : i32
    return %c0_i32, %c0_i32_0 : i32, i32
  }
  func.func @transform_12(%arg0: i32) -> (i32, i32, i32) {
    %c0_i32 = arith.constant 0 : i32
    %c0_i32_0 = arith.constant 0 : i32
    %c0_i32_1 = arith.constant 0 : i32
    return %arg0, %c0_i32, %c0_i32_0 : i32, i32, i32
  }
}

</mosaic_0001>

<bundles_post_ra>
// kernel: tpu_custom_call.1
= control target key start
LH: loop header
LB: loop body
LE: loop exit
PB: predicated region body
PF: predicated region fallthrough
CT: control target
= control target key end

     0   :  { %s1981_s0 = inlined_call_operand.vmem [shape: f32[2,8,32], index: 0, kind: input, shape index: {}]   ;;  %s1982_s1 = inlined_call_operand.vmem [shape: f32[1,32], index: 1, kind: input, shape index: {}]   ;;  %s1983_s2 = inlined_call_operand.vmem [shape: f32[1,32], index: 2, kind: input, shape index: {}]   ;;  %s1984_s3 = inlined_call_operand.vmem [shape: bf16[32,96], index: 3, kind: input, shape index: {}]   ;;  %s1985_s4 = inlined_call_operand.vmem [shape: bf16[32,32], index: 4, kind: input, shape index: {}]   ;;  %s1986_s5 = inlined_call_operand.vmem [shape: f32[1,32], index: 5, kind: input, shape index: {}]   ;;  %s1987_s6 = inlined_call_operand.vmem [shape: f32[1,32], index: 6, kind: input, shape index: {}]   ;;  %s1988_s7 = inlined_call_operand.vmem [shape: f32[1,32], index: 7, kind: input, shape index: {}]   ;;  %s1989_s8 = inlined_call_operand.vmem [shape: bf16[32,128], index: 8, kind: input, shape index: {}]   ;;  %s1990_s9 = inlined_call_operand.vmem [shape: f32[1,128], index: 9, kind: input, shape index: {}]   ;;  %s1991_s10 = inlined_call_operand.vmem [shape: bf16[128,32], index: 10, kind: input, shape index: {}]   ;;  %s1992_s11 = inlined_call_operand.vmem [shape: f32[1,32], index: 11, kind: input, shape index: {}]   ;;  %s1993_s12 = inlined_call_operand.hbm [shape: f32[2,8,32], index: 12, kind: output, shape index: {}]  }
   0x1   :  { %1994 = sst [smem:[#allocation5_spill]] %s1981_s0 }
   0x2   :  { %1995 = sst [smem:[#allocation6_spill]] %s1982_s1 }
   0x3   :  { %17 = vsyncpa [#allocation3], 0 }
   0x4   :  { %19 = vsyncpa [#allocation3 + $0x1], 0  ;;  %s1720_s21 = smov 0   ;;  %s1722_s22 = smov 0  }
   0x5   :  { %s1724_s23 = smov 0   ;;  %s1726_s24 = smov 0  }
   0x6 LB: > { %s1741_s25 = sadd.s32 4294967295, %s1642_s24   ;;  %s1327_s26 = sadd.s32 4294967294, %s1642_s24   ;;  %s1642_s24 = sphi %s1726_s24, %s2003_s24   ;;  %s1638_s23 = sphi %s1724_s23, %s2002_s23   ;;  %s1634_s22 = sphi %s1722_s22, %s2001_s22   ;;  %s1630_s21 = sphi %s1720_s21, %s2000_s21  }
   0x7   : > { %s1745_s27 = sadd.s32 1, %s1642_s24   ;;  %s289_s28 = sadd.s32 1, %s1638_s23 }
   0x8   : > { %s286_s29 = ssub.s32 %s1642_s24, %s1745_s27  ;;  %p299_p0 = scmp.ne.s32.totalorder %s1638_s23, %s1634_s22 }
   0x9   : > { %p287_p1 = scmp.eq.s32.totalorder %s286_s29, 0  ;;  %p300_p2 = scmp.eq.s32.totalorder %s1741_s25, 1 }
   0xa   : > { %p305_p3 = scmp.ne.s32.totalorder %s1634_s22, %s1630_s21  ;;  %p306_p4 = scmp.eq.s32.totalorder %s1327_s26, 1 }
   0xb   : > { %s1756_s30 = scalar_select %p287_p1, %s1638_s23, %s289_s28  }
   0xc   : > { %p1758_p5 = por %p300_p2, %p299_p0  ;;  %p1762_p6 = por %p306_p4, %p305_p3 }
   0xd   : > { %p1330_p7 = scmp.ge.s32.totalorder %s1642_s24, 1  ;;  %p364_p8 = scmp.lt.s32.totalorder %s1642_s24, 3 }
   0xf   : > { %p365_p9 = pnand %p1330_p7, %p364_p8 }
  0x10   : > { %p405_p10 = scmp.lt.s32.totalorder (!%p365_p9), %s1741_s25, 1  ;;  %vm413_vm0 = vcmask (!%p365_p9), 261120   ;;  %s1998_s0 = sld [smem:[#allocation5_spill]] (!%p365_p9)  ;;  %v1544_v7 = vld [vmem:[%s1984_s3] sm:$0xff] (!%p365_p9)   ;;  %v1644_v8 = vmov (!%p365_p9), 0.0   ;;  %vm1645_vm1 = vmmov (!%p365_p9), 0  }
  0x11   : > { %368 = sbr.rel (%p365_p9) target bundleno = 2502 (0x9c6), region = 68  ;;  %1403 = vmatprep.subr.bf16.mxu0 (!%p365_p9), %v1644_v8  ;;  %1407 = vmatprep.mubr.msk.bf16.mxu0 (!%p365_p9), %vm1645_vm1, %v1644_v8  ;;  %v1545_v9 = vld [vmem:[%s1984_s3 + $0x8] sm:$0xff] (!%p365_p9)   ;;  %s1999_s1 = sld [smem:[#allocation6_spill]] (!%p365_p9)  ;;  %v1334_v16 = vld [vmem:[%s1983_s2] ss:$0 sm:$0xff] (!%p365_p9)  ;;  %vm519_vm2 = vcmask (!%p365_p9), 64512  }
  0x12   : > { %1404 = vmatpush3.bf16.msra.mxu0 (!%p365_p9), %v1544_v7  ;;  %1423 = vmatprep.subr.bf16.mxu1 (!%p365_p9), %v1644_v8  ;;  %s1647_s20 = smov (!%p365_p9), 120   ;;  %s1648_s26 = smov (!%p365_p9), 112   ;;  %vm758_vm3 = vcmask (!%p365_p9), 1043456   ;;  %vm967_vm4 = vcmask (!%p365_p9), 130048   ;;  %vm969_vm5 = vcmask (!%p365_p9), 195584  }
  0x13   : > { %1405 = vmatprep.subr.bf16.mxu0 (!%p365_p9), %v1644_v8  ;;  %1425 = vmatprep.mubr.msk.bf16.mxu1 (!%p365_p9), %vm1645_vm1, %v1644_v8  ;;  %s1649_s28 = smov (!%p365_p9), 96   ;;  %s1650_s29 = smov (!%p365_p9), 64  }
  0x14   : > { %s1366_s18 = sshll.u32 (!%p365_p9), %s1741_s25, 7 }
  0x16   : > { %1406 = vmatpush3.bf16.msra.mxu0 (!%p365_p9), %v1545_v9 }
  0x17   : > { %1411 = vmatprep.subr.bf16.mxu0 (!%p365_p9), %v1644_v8  ;;  %v1333_v14 = vld [vmem:[%s1999_s1] ss:$0 sm:$0xff] (!%p365_p9) }
  0x18   : > { %s406_s15 = scalar_select %p405_p10, %s1741_s25, 1 }
  0x1a   : > { %s1332_s16 = sshll.u32 %s406_s15, 3 }
  0x1b   : > { %s408_s19 = scalar_lea.vmem %s1998_s0, %s1332_s16  ;;  %s1938_s0 = scalar_lea.hbm %s1993_s12, %s1366_s18 }
  0x1c   : > { %v1773_v0 = vld [vmem:[%s408_s19] sm:$0xff]  ;;  %s1646_s19 = smov 104   ;;  %s1654_s16 = smov [#allocation2]  }
  0x1d   : > { %v414_v1 = vsel %vm413_vm0, %v1773_v0, 0.0  ;;  %s1584_s17 = sshll.u32 %s1654_s16, 4  ;;  %s1585_s17 = int_to_ptr.vmem [resolvable:$false] %s1584_s17 }
  0x1e   : > { %415 = vadd.xlane.f32.xlu0 %v414_v1  ;;  %s1586_s1 = scalar_lea.vmem %s1585_s17, 256 }
  0xab   : > { %v416_v2 = vpop.xlane.xlu0 %415 }
  0xac   : > { %v418_v3 = vmul.f32 0.03125, %v416_v2 }
  0xae   : > { %v419_v4 = vsub.f32 %v1773_v0, %v418_v3 }
  0xb0   : > { %v420_v5 = vmul.f32 %v419_v4, %v419_v4 }
  0xb2   : > { %v421_v6 = vsel %vm413_vm0, %v420_v5, 0.0 }
  0xb3   : > { %422 = vadd.xlane.f32.xlu0 %v421_v6 }
 0x140   : > { %v423_v10 = vpop.xlane.xlu0 %422 }
 0x141   : > { %v424_v11 = vmul.f32 0.03125, %v423_v10 }
 0x143   : > { %v425_v12 = vadd.f32 1e-05, %v424_v11 }
 0x145   : > { %1558 = vrsqrt.f32 %v425_v12 }
 0x14f   : > { %v1559_v13 = vpop.eup %1558 }
 0x150   : > { %v427_v15 = vmul.f32 %v1559_v13, %v419_v4 }
 0x152   : > { %v434_v17 = vmul.f32 %v1333_v14, %v427_v15 }
 0x154   : > { %v441_v18 = vadd.f32 %v1334_v16, %v434_v17 }
 0x156   : > { %v442_v19 = vpack.c.bf16 %v441_v18, %v441_v18 }
 0x158   : > { %1408 = vmatmul.mubr.msk.bf16.vlgmr.msra.gmra.mrb[0].mxu0 %vm413_vm0, %v442_v19 }
 0x159   : > { %1413 = vmatprep.mubr.msk.bf16.mxu0 %vm1645_vm1, %v1644_v8 }
 0x22b   : > { %v496_v20 = vpop.f32.mrb[0].mxu0 }
 0x22c   : > { %509 = vrot.lane.b32.xlu0 %v496_v20, %s1646_s19  ;;  %503 = vrot.lane.b32.xlu1 %v496_v20, %s1647_s20  ;;  %v1409_v21 = vpop.f32.mrb[1].mxu0  ;;  %v512_v24 = vpack.c.bf16 %v496_v20, %v496_v20  ;;  %s1651_s19 = smov 8   ;;  %s1652_s20 = smov 16  }
 0x22d   : > { %v499_v22 = vpop.f32.mrb[2].mxu0 }
 0x22e   : > { %v1410_v23 = vpop.f32.mrb[3].mxu0 }
 0x230   : > { %506 = vrot.lane.b32.xlu1 %v496_v20, %s1648_s26  ;;  %s1653_s26 = smov 24  }
 0x234   : > { %517 = vrot.lane.b32.xlu1 %v512_v24, %s1649_s28 }
 0x29e   : > { %v504_v25 = vpop.permute.xlu1 %503  ;;  %v510_v29 = vpop.permute.xlu0 %509 }
 0x29f   : > { %v1802_v26 = vpack.c.bf16 %v504_v25, %v504_v25  ;;  %v515_v31 = vpack.c.bf16 %v510_v29, %v510_v29 }
 0x2a1   : > { %567 = vrot.lane.b32.xlu1 %v1802_v26, %s1649_s28 }
 0x2a2   : > { %v507_v27 = vpop.permute.xlu1 %506 }
 0x2a3   : > { %v514_v28 = vpack.c.bf16 %v507_v27, %v507_v27 }
 0x2a5   : > { %616 = vrot.lane.b32.xlu1 %v514_v28, %s1649_s28 }
 0x2a6   : > { %v518_v30 = vpop.permute.xlu1 %517 }
 0x2a7   : > { %v524_v32 = vsel %vm519_vm2, %v518_v30, 0 }
 0x2a8   : > { %1412 = vmatpush3.bf16.xpose.msra.mxu0 %v524_v32 }
 0x2a9   : > { %665 = vrot.lane.b32.xlu1 %v515_v31, %s1649_s28  ;;  %1417 = vmatprep.subr.bf16.mxu0 %v1644_v8 }
 0x2ad   : > { %753 = vrot.lane.b32.xlu1 %v512_v24, %s1650_s29 }
 0x2af   : > { %1414 = vmatmul.mubr.msk.bf16.vlgmr.msra.gmra.mrb[4].mxu0 %vm519_vm2, %v512_v24 }
 0x2b0   : > { %1419 = vmatprep.mubr.msk.bf16.mxu0 %vm1645_vm1, %v1644_v8 }
 0x313   : > { %v568_v33 = vpop.permute.xlu1 %567 }
 0x314   : > { %v573_v34 = vsel %vm519_vm2, %v568_v33, 0 }
 0x315   : > { %1418 = vmatpush3.bf16.xpose.msra.mxu0 %v573_v34 }
 0x316   : > { %1429 = vmatprep.subr.bf16.mxu0 %v1644_v8 }
 0x317   : > { %v617_v35 = vpop.permute.xlu1 %616 }
 0x318   : > { %v622_v36 = vsel %vm519_vm2, %v617_v35, 0  ;;  %v1546_v35 = vld [vmem:[%s1985_s4] sm:$0xff]  }
 0x319   : > { %1424 = vmatpush3.bf16.xpose.msra.mxu1 %v622_v36 }
 0x31a   : > { %1435 = vmatprep.subr.bf16.mxu1 %v1644_v8 }
 0x31b   : > { %v666_v37 = vpop.permute.xlu1 %665 }
 0x31c   : > { %v671_v38 = vsel %vm519_vm2, %v666_v37, 0  ;;  %1420 = vmatmul.mubr.msk.bf16.vlgmr.msra.gmra.mrb[8].mxu0 %vm519_vm2, %v1802_v26  ;;  %v1547_v37 = vld [vmem:[%s1985_s4 + $0x8] sm:$0xff]  }
 0x31d   : > { %1430 = vmatpush3.bf16.xpose.msra.mxu0 %v671_v38  ;;  %1431 = vmatprep.mubr.msk.bf16.mxu0 %vm1645_vm1, %v1644_v8 }
 0x31e   : > { %1441 = vmatprep.subr.bf16.mxu0 %v1644_v8 }
 0x31f   : > { %v754_v39 = vpop.permute.xlu1 %753 }
 0x320   : > { %v760_v40 = vsel %vm758_vm3, %v754_v39, 0  ;;  %1426 = vmatmul.mubr.msk.bf16.vlgmr.msra.gmra.mrb[0].mxu1 %vm519_vm2, %v514_v28 }
 0x321   : > { %1436 = vmatpush3.bf16.msra.mxu1 %v760_v40  ;;  %1437 = vmatprep.mubr.msk.bf16.mxu1 %vm1645_vm1, %v1644_v8 }
 0x322   : > { %1447 = vmatprep.subr.bf16.mxu1 %v1644_v8 }
 0x324   : > { %1432 = vmatmul.mubr.msk.bf16.vlgmr.msra.gmra.mrb[12].mxu0 %vm519_vm2, %v515_v31 }
 0x325   : > { %1443 = vmatprep.mubr.msk.bf16.mxu0 %vm1645_vm1, %v1644_v8 }
 0x382   : > { %v560_v41 = vpop.f32.mrb[4].mxu0 }
 0x383   : > { %v1415_v42 = vpop.f32.mrb[5].mxu0  ;;  %v713_v43 = vsel %vm519_vm2, %v560_v41, -inf }
 0x384   : > { %714 = vmax.xlane.f32.xlu1 %v713_v43  ;;  %v563_v44 = vpop.f32.mrb[6].mxu0 }
 0x385   : > { %v1416_v45 = vpop.f32.mrb[7].mxu0 }
 0x3ef   : > { %v609_v46 = vpop.f32.mrb[8].mxu0 }
 0x3f0   : > { %v1421_v47 = vpop.f32.mrb[9].mxu0  ;;  %v716_v48 = vsel %vm519_vm2, %v609_v46, -inf }
 0x3f1   : > { %717 = vmax.xlane.f32.xlu0 %v716_v48  ;;  %v612_v49 = vpop.f32.mrb[10].mxu0 }
 0x3f2   : > { %v1422_v50 = vpop.f32.mrb[11].mxu0 }
 0x3f3   : > { %v658_v51 = vpop.f32.mrb[0].mxu1 }
 0x3f4   : > { %v1427_v52 = vpop.f32.mrb[1].mxu1  ;;  %v719_v53 = vsel %vm519_vm2, %v658_v51, -inf }
 0x3f5   : > { %v661_v54 = vpop.f32.mrb[2].mxu1  ;;  %720 = vmax.xlane.f32.xlu1 %v719_v53 }
 0x3f6   : > { %v1428_v55 = vpop.f32.mrb[3].mxu1 }
 0x3f7   : > { %v707_v56 = vpop.f32.mrb[12].mxu0 }
 0x3f8   : > { %v1433_v57 = vpop.f32.mrb[13].mxu0  ;;  %v722_v58 = vsel %vm519_vm2, %v707_v56, -inf }
 0x3f9   : > { %723 = vmax.xlane.f32.xlu0 %v722_v58  ;;  %v710_v59 = vpop.f32.mrb[14].mxu0 }
 0x3fa   : > { %v1434_v60 = vpop.f32.mrb[15].mxu0 }
 0x406   : > { %850 = vrot.lane.b32.xlu1 %v514_v28, %s1650_s29 }
 0x40a   : > { %898 = vrot.lane.b32.xlu1 %v515_v31, %s1650_s29 }
 0x40f   : > { %802 = vrot.lane.b32.xlu0 %v1802_v26, %s1650_s29  ;;  %s402_s29 = sand.u32 1, %s1634_s22  }
 0x410   : > { %s1331_s15 = sshll.u32 %s402_s29, 3  ;;  %s1255_s25 = scalar_lea.sflag [#allocation3], %s402_s29 }
 0x411   : > { %v715_v61 = vpop.xlane.xlu1 %714 }
 0x412   : > { %v725_v62 = vsub.f32 %v560_v41, %v715_v61 }
 0x414   : > { %v729_v63 = vmul.f32 1.442695, %v725_v62 }
 0x416   : > { %1560 = vpow2.f32 %v729_v63 }
 0x420   : > { %v1561_v1 = vpop.eup %1560 }
 0x421   : > { %v749_v2 = vpack.c.bf16 %v1561_v1, %v1561_v1  ;;  %v737_v28 = vsel %vm519_vm2, %v1561_v1, 0.0 }
 0x423   : > { %1438 = vmatmul.mubr.msk.bf16.vlgmr.msra.gmra.mrb[4].mxu1 %vm519_vm2, %v749_v2 }
 0x424   : > { %1449 = vmatprep.mubr.msk.bf16.mxu1 %vm1645_vm1, %v1644_v8 }
 0x47e   : > { %v718_v3 = vpop.xlane.xlu0 %717 }
 0x47f   : > { %v726_v4 = vsub.f32 %v609_v46, %v718_v3  ;;  %v1346_v3 = vld [vmem:[%s1986_s5] ss:$0 sm:$0xff] }
 0x481   : > { %v731_v5 = vmul.f32 1.442695, %v726_v4 }
 0x482   : > { %v721_v6 = vpop.xlane.xlu1 %720 }
 0x483   : > { %1562 = vpow2.f32 %v731_v5  ;;  %v727_v7 = vsub.f32 %v658_v51, %v721_v6 }
 0x485   : > { %v733_v9 = vmul.f32 1.442695, %v727_v7 }
 0x486   : > { %v851_v10 = vpop.permute.xlu1 %850  ;;  %v724_v11 = vpop.xlane.xlu0 %723 }
 0x487   : > { %1564 = vpow2.f32 %v733_v9  ;;  %v856_v12 = vsel %vm758_vm3, %v851_v10, 0  ;;  %v728_v13 = vsub.f32 %v707_v56, %v724_v11 }
 0x488   : > { %1448 = vmatpush3.bf16.msra.mxu1 %v856_v12 }
 0x489   : > { %v735_v14 = vmul.f32 1.442695, %v728_v13  ;;  %1459 = vmatprep.subr.bf16.mxu1 %v1644_v8 }
 0x48a   : > { %v803_v15 = vpop.permute.xlu0 %802  ;;  %v899_v18 = vpop.permute.xlu1 %898 }
 0x48b   : > { %1566 = vpow2.f32 %v735_v14  ;;  %v808_v16 = vsel %vm758_vm3, %v803_v15, 0  ;;  %v904_v21 = vsel %vm758_vm3, %v899_v18, 0  ;;  %v1550_v18 = vld [vmem:[%s1991_s10] sm:$0xff]  }
 0x48c   : > { %1442 = vmatpush3.bf16.msra.mxu0 %v808_v16 }
 0x48d   : > { %v1563_v17 = vpop.eup %1562  ;;  %1453 = vmatprep.subr.bf16.mxu0 %v1644_v8 }
 0x48e   : > { %v740_v19 = vsel %vm519_vm2, %v1563_v17, 0.0  ;;  %v750_v20 = vpack.c.bf16 %v1563_v17, %v1563_v17  ;;  %v1548_v17 = vld [vmem:[%s1989_s8] sm:$0xff]  }
 0x48f   : > { %741 = vadd.xlane.f32.xlu0 %v740_v19  ;;  %v1551_v19 = vld [vmem:[%s1991_s10 + $0x8] sm:$0xff]  }
 0x490   : > { %1444 = vmatmul.mubr.msk.bf16.vlgmr.msra.gmra.mrb[16].mxu0 %vm519_vm2, %v750_v20  ;;  %v1552_v20 = vld [vmem:[%s1991_s10 + $0x10] sm:$0xff]  }
 0x491   : > { %v1565_v22 = vpop.eup %1564  ;;  %1454 = vmatpush3.bf16.msra.mxu0 %v904_v21  ;;  %1455 = vmatprep.mubr.msk.bf16.mxu0 %vm1645_vm1, %v1644_v8 }
 0x492   : > { %v743_v23 = vsel %vm519_vm2, %v1565_v22, 0.0  ;;  %v751_v24 = vpack.c.bf16 %v1565_v22, %v1565_v22  ;;  %1467 = vmatprep.subr.bf16.mxu0 %v1644_v8 }
 0x493   : > { %744 = vadd.xlane.f32.xlu1 %v743_v23 }
 0x494   : > { %1450 = vmatmul.mubr.msk.bf16.vlgmr.msra.gmra.mrb[8].mxu1 %vm519_vm2, %v751_v24 }
 0x495   : > { %v1567_v25 = vpop.eup %1566  ;;  %1463 = vmatprep.mubr.msk.bf16.mxu1 %vm1645_vm1, %v1644_v8  ;;  %1460 = vmatpush3.bf16.msra.mxu1 %v1546_v35  ;;  %v1557_v35 = vld [vmem:[%s1991_s10 + $0x38] sm:$0xff]  }
 0x496   : > { %v746_v26 = vsel %vm519_vm2, %v1567_v25, 0.0  ;;  %v752_v27 = vpack.c.bf16 %v1567_v25, %v1567_v25  ;;  %1461 = vmatprep.subr.bf16.mxu1 %v1644_v8  ;;  %v1350_v25 = vld [vmem:[%s1987_s6] ss:$0 sm:$0xff] }
 0x497   : > { %747 = vadd.xlane.f32.xlu0 %v746_v26 }
 0x498   : > { %1456 = vmatmul.mubr.msk.bf16.vlgmr.msra.gmra.mrb[20].mxu0 %vm519_vm2, %v752_v27  ;;  %v1351_v27 = vld [vmem:[%s1988_s7] ss:$0 sm:$0xff] }
 0x499   : > { %1471 = vmatprep.mubr.msk.bf16.mxu0 %vm1645_vm1, %v1644_v8  ;;  %1462 = vmatpush3.bf16.msra.mxu1 %v1547_v37 }
 0x49a   : > { %1475 = vmatprep.subr.bf16.mxu1 %v1644_v8  ;;  %1468 = vmatpush3.bf16.msra.mxu0 %v1548_v17 }
 0x49b   : > { %738 = vadd.xlane.f32.xlu0 %v737_v28  ;;  %1469 = vmatprep.subr.bf16.mxu0 %v1644_v8 }
 0x4f6   : > { %v796_v29 = vpop.f32.mrb[4].mxu1 }
 0x4f7   : > { %v1439_v30 = vpop.f32.mrb[5].mxu1 }
 0x4f8   : > { %v799_v31 = vpop.f32.mrb[6].mxu1 }
 0x4f9   : > { %v1440_v32 = vpop.f32.mrb[7].mxu1  ;;  %v1553_v31 = vld [vmem:[%s1991_s10 + $0x18] sm:$0xff]  }
 0x4fa   : > { %v1554_v32 = vld [vmem:[%s1991_s10 + $0x20] sm:$0xff]  }
 0x51c   : > { %v742_v33 = vpop.xlane.xlu0 %741 }
 0x51d   : > { %1568 = vrcp.f32 %v742_v33  ;;  %v1555_v33 = vld [vmem:[%s1991_s10 + $0x28] sm:$0xff]  }
 0x520   : > { %v745_v34 = vpop.xlane.xlu1 %744 }
 0x521   : > { %1570 = vrcp.f32 %v745_v34  ;;  %v1556_v34 = vld [vmem:[%s1991_s10 + $0x30] sm:$0xff]  }
 0x524   : > { %v748_v36 = vpop.xlane.xlu0 %747 }
 0x525   : > { %1572 = vrcp.f32 %v748_v36  ;;  %v1352_v36 = vld [vmem:[%s1990_s9] ss:$0 sm:$0xff] }
 0x527   : > { %v1569_v38 = vpop.eup %1568 }
 0x528   : > { %v739_v56 = vpop.xlane.xlu0 %738 }
 0x529   : > { %1574 = vrcp.f32 %v739_v56 }
 0x52b   : > { %v1571_v44 = vpop.eup %1570 }
 0x52f   : > { %v1573_v50 = vpop.eup %1572 }
 0x533   : > { %v1575_v57 = vpop.eup %1574 }
 0x534   : > { %v950_v59 = vmul.f32 %v1575_v57, %v796_v29 }
 0x563   : > { %v844_v39 = vpop.f32.mrb[16].mxu0 }
 0x564   : > { %v951_v40 = vmul.f32 %v1569_v38, %v844_v39  ;;  %v1445_v41 = vpop.f32.mrb[17].mxu0 }
 0x565   : > { %v847_v42 = vpop.f32.mrb[18].mxu0 }
 0x566   : > { %955 = vrot.lane.b32.xlu1 %v951_v40, %s1651_s19  ;;  %v1446_v43 = vpop.f32.mrb[19].mxu0  ;;  %s404_s19 = scalar_lea.vmem [#allocation2], %s1331_s15 }
 0x567   : > { %v892_v45 = vpop.f32.mrb[8].mxu1 }
 0x568   : > { %v952_v46 = vmul.f32 %v1571_v44, %v892_v45  ;;  %v1451_v47 = vpop.f32.mrb[9].mxu1 }
 0x569   : > { %v895_v48 = vpop.f32.mrb[10].mxu1  ;;  %v1356_v47 = vld [vmem:[%s1992_s11] ss:$0 sm:$0xff] }
 0x56a   : > { %v1452_v49 = vpop.f32.mrb[11].mxu1  ;;  %959 = vrot.lane.b32.xlu0 %v952_v46, %s1652_s20  ;;  %s1268_s20 = sshll.u32 %s404_s19, 4  ;;  %s1940_s20 = int_to_ptr.vmem [resolvable:$true] %s1268_s20 }
 0x56b   : > { %v940_v51 = vpop.f32.mrb[20].mxu0  ;;  %s1580_s15 = scalar_lea.vmem %s1940_s20, 128  ;;  %p1587_p0 = scmp.lt.s32.totalorder %s1940_s20, %s1585_s17 }
 0x56c   : > { %v953_v52 = vmul.f32 %v1573_v50, %v940_v51  ;;  %v1457_v53 = vpop.f32.mrb[21].mxu0  ;;  %p1581_p11 = scmp.ne.s32.totalorder %s1940_s20, %s1580_s15  ;;  %p1588_p1 = scmp.lt.s32.totalorder %s1586_s1, %s1580_s15 }
 0x56d   : > { %v943_v54 = vpop.f32.mrb[22].mxu0 }
 0x56e   : > { %963 = vrot.lane.b32.xlu1 %v953_v52, %s1653_s26  ;;  %v1458_v55 = vpop.f32.mrb[23].mxu0  ;;  %p1582_p12 = pnand %p1581_p11, %p1758_p5  ;;  %p1589_p2 = por %p1588_p1, %p1587_p0 }
 0x570   : > { %p1583_p13 = pneg %p1582_p12 }
 0x572   : > { %p1590_p3 = pnand %p1589_p2, %p1583_p13 }
 0x5d8   : > { %v956_v58 = vpop.permute.xlu1 %955 }
 0x5d9   : > { %v966_v61 = vsel %vm519_vm2, %v950_v59, %v956_v58 }
 0x5dc   : > { %v960_v60 = vpop.permute.xlu0 %959 }
 0x5dd   : > { %v968_v62 = vsel %vm967_vm4, %v966_v61, %v960_v60 }
 0x5e0   : > { %v964_v63 = vpop.permute.xlu1 %963 }
 0x5e1   : > { %v970_v1 = vsel %vm969_vm5, %v968_v62, %v964_v63 }
 0x5e2   : > { %v971_v2 = vpack.c.bf16 %v970_v1, %v970_v1 }
 0x5e4   : > { %1464 = vmatmul.mubr.msk.bf16.vlgmr.msra.gmra.mrb[12].mxu1 %vm413_vm0, %v971_v2 }
 0x5e5   : > { %1491 = vmatprep.mubr.msk.bf16.mxu1 %vm1645_vm1, %v1644_v8  ;;  %1476 = vmatpush3.bf16.msra.mxu1 %v1550_v18 }
 0x5e6   : > { %1477 = vmatprep.subr.bf16.mxu1 %v1644_v8 }
 0x5e9   : > { %1478 = vmatpush3.bf16.msra.mxu1 %v1551_v19 }
 0x5ea   : > { %1479 = vmatprep.subr.bf16.mxu1 %v1644_v8 }
 0x5ed   : > { %1480 = vmatpush3.bf16.msra.mxu1 %v1552_v20 }
 0x5ee   : > { %1481 = vmatprep.subr.bf16.mxu1 %v1644_v8 }
 0x5f1   : > { %1482 = vmatpush3.bf16.msra.mxu1 %v1553_v31 }
 0x5f2   : > { %1483 = vmatprep.subr.bf16.mxu1 %v1644_v8 }
 0x5f5   : > { %1484 = vmatpush3.bf16.msra.mxu1 %v1554_v32 }
 0x5f6   : > { %1485 = vmatprep.subr.bf16.mxu1 %v1644_v8 }
 0x5f9   : > { %1486 = vmatpush3.bf16.msra.mxu1 %v1555_v33 }
 0x5fa   : > { %1487 = vmatprep.subr.bf16.mxu1 %v1644_v8 }
 0x5fd   : > { %1488 = vmatpush3.bf16.msra.mxu1 %v1556_v34 }
 0x5fe   : > { %1489 = vmatprep.subr.bf16.mxu1 %v1644_v8 }
 0x601   : > { %1490 = vmatpush3.bf16.msra.mxu1 %v1557_v35 }
 0x6b7   : > { %v1032_v4 = vpop.f32.mrb[12].mxu1 }
 0x6b8   : > { %v1033_v5 = vadd.f32 %v1346_v3, %v1032_v4  ;;  %v1465_v6 = vpop.f32.mrb[13].mxu1 }
 0x6b9   : > { %v1035_v7 = vpop.f32.mrb[14].mxu1 }
 0x6ba   : > { %v1875_v9 = vadd.f32 %v1033_v5, %v1773_v0  ;;  %v1466_v10 = vpop.f32.mrb[15].mxu1  ;;  %v1549_v0 = vld [vmem:[%s1989_s8 + $0x8] sm:$0xff]  }
 0x6bb   : > { %1470 = vmatpush3.bf16.msra.mxu0 %v1549_v0 }
 0x6bc   : > { %v1041_v11 = vsel %vm413_vm0, %v1875_v9, 0.0 }
 0x6bd   : > { %1042 = vadd.xlane.f32.xlu1 %v1041_v11 }
 0x74a   : > { %v1043_v12 = vpop.xlane.xlu1 %1042 }
 0x74b   : > { %v1044_v13 = vmul.f32 0.03125, %v1043_v12 }
 0x74d   : > { %v1045_v14 = vsub.f32 %v1875_v9, %v1044_v13 }
 0x74f   : > { %v1046_v15 = vmul.f32 %v1045_v14, %v1045_v14 }
 0x751   : > { %v1047_v16 = vsel %vm413_vm0, %v1046_v15, 0.0 }
 0x752   : > { %1048 = vadd.xlane.f32.xlu0 %v1047_v16 }
 0x7df   : > { %v1049_v21 = vpop.xlane.xlu0 %1048 }
 0x7e0   : > { %v1050_v22 = vmul.f32 0.03125, %v1049_v21 }
 0x7e2   : > { %v1051_v23 = vadd.f32 1e-05, %v1050_v22 }
 0x7e4   : > { %1576 = vrsqrt.f32 %v1051_v23 }
 0x7ee   : > { %v1577_v24 = vpop.eup %1576 }
 0x7ef   : > { %v1053_v26 = vmul.f32 %v1577_v24, %v1045_v14 }
 0x7f1   : > { %v1060_v28 = vmul.f32 %v1350_v25, %v1053_v26 }
 0x7f3   : > { %v1067_v29 = vadd.f32 %v1351_v27, %v1060_v28 }
 0x7f5   : > { %v1068_v30 = vpack.c.bf16 %v1067_v29, %v1067_v29 }
 0x7f7   : > { %1472 = vmatmul.mubr.msk.bf16.vlgmr.msra.gmra.mrb[24].mxu0 %vm413_vm0, %v1068_v30 }
 0x8ca   : > { %v1129_v37 = vpop.f32.mrb[24].mxu0 }
 0x8cb   : > { %v1130_v38 = vadd.f32 %v1352_v36, %v1129_v37  ;;  %v1473_v39 = vpop.f32.mrb[25].mxu0 }
 0x8cc   : > { %v1132_v40 = vpop.f32.mrb[26].mxu0 }
 0x8cd   : > { %v1136_v41 = vmul.f32 0.70710677, %v1130_v38  ;;  %v1474_v42 = vpop.f32.mrb[27].mxu0  ;;  %v1135_v8 = vmul.f32 0.5, %v1130_v38 }
 0x8cf   : > { %1578 = verf.f32 %v1136_v41 }
 0x8d9   : > { %v1579_v43 = vpop.eup %1578 }
 0x8da   : > { %v1138_v44 = vadd.f32 1.0, %v1579_v43 }
 0x8dc   : > { %v1139_v45 = vmul.f32 %v1138_v44, %v1135_v8 }
 0x8de   : > { %v1140_v46 = vpack.c.bf16 %v1139_v45, %v1139_v45 }
 0x8e0   : > { %1492 = vmatmul.mubr.bf16.vlgmr.msra.gmra.mrb[16].mxu1 %v1140_v46 }
 0x9b3   : > { %v1246_v48 = vpop.f32.mrb[16].mxu1 }
 0x9b4   : > { %v1247_v49 = vadd.f32 %v1356_v47, %v1246_v48  ;;  %v1493_v50 = vpop.f32.mrb[17].mxu1 }
 0x9b5   : > { %v1249_v51 = vpop.f32.mrb[18].mxu1 }
 0x9b6   : > { %v1252_v52 = vadd.f32 %v1247_v49, %v1875_v9  ;;  %v1494_v53 = vpop.f32.mrb[19].mxu1 }
 0x9b8   : > { %1253 = vst.msk [vmem:[%s404_s19] sm:$0xff] %vm413_vm0, %v1252_v52 }
 0x9b9   : > { %1593 = shalt.err (!%p1590_p3)
}
 0x9ba   : > { %s1594_s29 = scalar_lea.hbm %s1938_s0, 128  ;;  %s1598_s26 = scalar_lea.hbm %s1993_s12, 256 }
 0x9bb   : > { %p1595_p4 = scmp.ne.s32.totalorder %s1938_s0, %s1594_s29  ;;  %p1599_p9 = scmp.lt.u32.totalorder %s1938_s0, %s1993_s12 }
 0x9bc   : > { %p1600_p10 = scmp.lt.u32.totalorder %s1598_s26, %s1594_s29  ;;  %p1602_p12 = scmp.lt.u32.totalorder %s1594_s29, %s1938_s0 }
 0x9bd   : > { %p1596_p7 = pnand %p1595_p4, %p1758_p5 }
 0x9be   : > { %p1601_p11 = por %p1600_p10, %p1599_p9 }
 0x9bf   : > { %p1597_p8 = pneg %p1596_p7 }
 0x9c0   : > { %p1603_p13 = por %p1602_p12, %p1601_p11 }
 0x9c2   : > { %p1604_p0 = pnand %p1603_p13, %p1597_p8 }
 0x9c4   : > { %1607 = shalt.err (!%p1604_p0)
}
 0x9c5   : > { %1495 = dma.vmem_to_hbm [thread:$0]  (%p1758_p5), %s1940_s20, 128, %s1938_s0, %s1255_s25  }
 0x9c6 PF: > { %p1501_p1 = scmp.ge.s32.totalorder %s1642_s24, 2  ;;  %s1280_s1 = sand.u32 1, %s1630_s21  }
 0x9c7   : > { %s1281_s15 = scalar_lea.sflag [#allocation3], %s1280_s1 }
 0x9c8   : > { %p1498_p2 = pnand %p1501_p1, %p1762_p6 }
 0x9ca   : > { %1625 = dma.done.wait (!%p1498_p2), %s1281_s15, 128  }
 0x9cb   : > { %1627 = vsyncadd (!%p1498_p2), %s1281_s15, 4294967168  ;;  %p22_p3 = scmp.ge.s32.totalorder %s1745_s27, 4   ;;  %s2000_s21 = smov %s1634_s22 }
 0x9cc   : > { %s2001_s22 = smov %s1638_s23  ;;  %s2002_s23 = smov %s1756_s30 }
 0x9cd   : > { %s2003_s24 = smov %s1745_s27  ;;  %24 = sbr.rel (!%p22_p3) target bundleno = 6 (0x6), region = 103 }
 0x9d4   :  { %1286 = vsyncpa [#allocation3], 1 }
 0x9d5   :  { %1288 = vsyncpa [#allocation3 + $0x1], 1 }

</bundles_post_ra>
